<compile_context>
chip_gen: v6e
topology: v6e:2x2x1
jax: 0.10.0
libtpu: 0.0.40
codegen_flags: <defaults>
</compile_context>

<pallas_src>
import jax
import jax.numpy as jnp
from jax.experimental import pallas as pl
from jax.experimental.pallas import tpu as pltpu


# ---------------------------------------------------------------------------
# Generation-aware budgets.
# ---------------------------------------------------------------------------
def _vmem_capacity_bytes():
    try:
        info = pltpu.get_tpu_info()
        for attr in ("vmem_capacity_bytes", "vmem_bytes", "vmem_size_bytes"):
            v = getattr(info, attr, None)
            if v:
                return int(v)
    except Exception:
        pass
    return 64 * 1024 * 1024          # conservative default: assume v7x-sized VMEM


def _hw_config():
    """Budgets in bytes, keyed off physical VMEM size."""
    vmem = _vmem_capacity_bytes()
    if vmem >= 100 * 1024 * 1024:    # v5e / v6e: 128 MiB physical VMEM
        return {
            "vmem_limit": 64 * 1024 * 1024,
            # double-buffered in+out ~= 4x slab + tiny weights stays < limit
            "fused_slab": 10 * 1024 * 1024,
            "tile_bytes": 8 * 1024 * 1024,
        }
    # v7x: 64 MiB physical VMEM -> tighter budgets.
    return {
        "vmem_limit": 32 * 1024 * 1024,
        "fused_slab": 5 * 1024 * 1024,
        "tile_bytes": 4 * 1024 * 1024,
    }


# ---------------------------------------------------------------------------
# Fused single-pass kernel (small C*HW slabs): read x once, write once.
# ---------------------------------------------------------------------------
def _se_fused(x, w1, b1, w2, b2, cfg, donate=False):
    """x: (B, C, HW); nn.Linear shapes: w1 (Cr, C), b1 (Cr,), w2 (C, Cr), b2 (C,)."""
    B, C, HW = x.shape
    Cr = w1.shape[0]
    # Tiny weights: keep the excitation math in f32 regardless of param dtype.
    w1t = jnp.transpose(w1).astype(jnp.float32)   # (C, Cr)
    w2t = jnp.transpose(w2).astype(jnp.float32)   # (Cr, C)
    b1r = b1.reshape(1, Cr).astype(jnp.float32)
    b2r = b2.reshape(1, C).astype(jnp.float32)
    inv_hw = 1.0 / HW

    def kernel(x_ref, w1t_ref, b1_ref, w2t_ref, b2_ref, o_ref):
        xt = x_ref[...]                                             # (1, C, HW)
        # Squeeze: f32-accumulated cross-lane sum (no f32 copy of the slab).
        pooled = jnp.sum(xt, axis=-1, dtype=jnp.float32) * inv_hw   # (1, C)
        # Excitation (tiny; M=1 matmuls are fine on this small-slab path).
        h = jnp.dot(pooled, w1t_ref[...],
                    preferred_element_type=jnp.float32) + b1_ref[...]
        h = jnp.maximum(h, 0.0)                                     # (1, Cr)
        y = jnp.dot(h, w2t_ref[...],
                    preferred_element_type=jnp.float32) + b2_ref[...]
        y = jnp.clip(y, 0.0, 1.0).astype(xt.dtype)                  # (1, C)
        # Scale: per-(B, C) gate lane-broadcast across HW, in input dtype.
        o_ref[...] = xt * y[:, :, None]

    return pl.pallas_call(
        kernel,
        out_shape=jax.ShapeDtypeStruct((B, C, HW), x.dtype),
        grid_spec=pltpu.PrefetchScalarGridSpec(
            num_scalar_prefetch=0,
            grid=(B,),
            in_specs=[
                pl.BlockSpec((1, C, HW), lambda b: (b, 0, 0)),
                pl.BlockSpec((C, Cr), lambda b: (0, 0)),
                pl.BlockSpec((1, Cr), lambda b: (0, 0)),
                pl.BlockSpec((Cr, C), lambda b: (0, 0)),
                pl.BlockSpec((1, C), lambda b: (0, 0)),
            ],
            out_specs=pl.BlockSpec((1, C, HW), lambda b: (b, 0, 0)),
        ),
        compiler_params=pltpu.CompilerParams(
            dimension_semantics=("parallel",),
            vmem_limit_bytes=cfg["vmem_limit"]),
        input_output_aliases=({0: 0} if donate else {}),
    )(x, w1t, b1r, w2t, b2r)


# ---------------------------------------------------------------------------
# Two-pass path (large slabs): tiled reduce -> batched FC (XLA) -> tiled scale.
# ---------------------------------------------------------------------------
def _choose_hw_tile(HW, C, itemsize, tile_bytes, hw_tile):
    if hw_tile is None:
        lanes = tile_bytes // max(C * itemsize, 1)
        hw_tile = max(128, (lanes // 128) * 128)
    else:
        hw_tile = max(128, (hw_tile // 128) * 128)   # lane axis: multiple of 128
    return HW if hw_tile >= HW else hw_tile          # full-dim block is exempt


def _se_two_pass(x, w1, b1, w2, b2, cfg, hw_tile=None, donate=False):
    """x: (B, C, HW)."""
    B, C, HW = x.shape
    hw_tile = _choose_hw_tile(HW, C, x.dtype.itemsize, cfg["tile_bytes"], hw_tile)
    n_tiles = pl.cdiv(HW, hw_tile)
    needs_mask = (HW % hw_tile) != 0          # static: last HW tile is ragged

    # ---- Pass 1: per-(B, C) f32 sums over HW (lane reduction) --------------
    def pool_kernel(x_ref, sum_ref):
        t = pl.program_id(1)

        @pl.when(t == 0)
        def _init():
            sum_ref[...] = jnp.zeros_like(sum_ref)

        xt = x_ref[...]                                       # (1, C, hw_tile)
        if needs_mask:
            # Mask only the ragged last tile; full tiles take the cheap path.
            @pl.when(t == n_tiles - 1)
            def _ragged():
                col = (jax.lax.broadcasted_iota(jnp.int32, (1, 1, hw_tile), 2)
                       + t * hw_tile)
                xm = jnp.where(col < HW, xt, jnp.zeros((), xt.dtype))
                sum_ref[...] += jnp.sum(xm, axis=-1, dtype=jnp.float32)

            @pl.when(t != n_tiles - 1)
            def _full():
                sum_ref[...] += jnp.sum(xt, axis=-1, dtype=jnp.float32)
        else:
            sum_ref[...] += jnp.sum(xt, axis=-1, dtype=jnp.float32)

    sums = pl.pallas_call(
        pool_kernel,
        out_shape=jax.ShapeDtypeStruct((B, C), jnp.float32),
        grid_spec=pltpu.PrefetchScalarGridSpec(
            num_scalar_prefetch=0,
            grid=(B, n_tiles),
            in_specs=[pl.BlockSpec((1, C, hw_tile), lambda b, t: (b, 0, t))],
            out_specs=pl.BlockSpec((1, C), lambda b, t: (b, 0)),
        ),
        compiler_params=pltpu.CompilerParams(
            dimension_semantics=("parallel", "arbitrary"),
            vmem_limit_bytes=cfg["vmem_limit"]),
    )(x)

    # ---- Tiny batched FC in plain XLA (one real (B,C)x(C,Cr) matmul) -------
    pooled = sums * (1.0 / HW)                                     # (B, C) f32
    h = jnp.maximum(pooled @ w1.astype(jnp.float32).T
                    + b1.astype(jnp.float32), 0.0)                 # (B, Cr)
    y = h @ w2.astype(jnp.float32).T + b2.astype(jnp.float32)      # (B, C)
    y = jnp.clip(y, 0.0, 1.0).astype(x.dtype).reshape(B, C, 1)

    # ---- Pass 2: lane-broadcast scale in the input dtype --------------------
    def scale_kernel(x_ref, y_ref, o_ref):
        o_ref[...] = x_ref[...] * y_ref[...]

    out = pl.pallas_call(
        scale_kernel,
        out_shape=jax.ShapeDtypeStruct((B, C, HW), x.dtype),
        grid_spec=pltpu.PrefetchScalarGridSpec(
            num_scalar_prefetch=0,
            grid=(B, n_tiles),
            in_specs=[
                pl.BlockSpec((1, C, hw_tile), lambda b, t: (b, 0, t)),
                pl.BlockSpec((1, C, 1), lambda b, t: (b, 0, 0)),
            ],
            out_specs=pl.BlockSpec((1, C, hw_tile), lambda b, t: (b, 0, t)),
        ),
        compiler_params=pltpu.CompilerParams(
            dimension_semantics=("parallel", "parallel"),
            vmem_limit_bytes=cfg["vmem_limit"]),
        input_output_aliases=({0: 0} if donate else {}),
    )(x, y)
    return out


# ---------------------------------------------------------------------------
# Public wrapper (NCHW in / NCHW out, matching the PyTorch module).
# ---------------------------------------------------------------------------
def se_layer(x_nchw, w1, b1, w2, b2, *, hw_tile=None, force_two_pass=False,
             donate=False):
    """SELayer forward.  x_nchw: (B, C, H, W); nn.Linear-shaped params:
    w1: (Cr, C), b1: (Cr,), w2: (C, Cr), b2: (C,), Cr = C // reduction.
    Set donate=True only if the caller can donate x (otherwise XLA inserts a
    copy to honor the input/output alias)."""
    B, C, H, W = x_nchw.shape
    HW = H * W
    cfg = _hw_config()

    # Zero-copy view (merging the two minor dims): channels on sublanes,
    # H*W on lanes.  No transpose passes over x.
    x = x_nchw.reshape(B, C, HW)

    slab_bytes = C * HW * x.dtype.itemsize
    if slab_bytes <= cfg["fused_slab"] and not force_two_pass:
        out = _se_fused(x, w1, b1, w2, b2, cfg, donate=donate)
    else:
        out = _se_two_pass(x, w1, b1, w2, b2, cfg, hw_tile=hw_tile, donate=donate)

    return out.reshape(B, C, H, W)


def se_layer_ref(x_nchw, w1, b1, w2, b2):
    """Pure-JAX reference mirroring the PyTorch forward."""
    y = jnp.mean(x_nchw, axis=(2, 3))                      # (B, C)
    y = jnp.maximum(y @ w1.T + b1, 0.0)                    # (B, Cr)
    y = y @ w2.T + b2                                      # (B, C)
    y = jnp.clip(y, 0.0, 1.0)
    return x_nchw * y[:, :, None, None]


if __name__ == "__main__":
    key = jax.random.PRNGKey(0)

    def make_params(k, C, Cr, dtype=jnp.float32):
        k1, k2, k3, k4 = jax.random.split(k, 4)
        w1 = jax.random.uniform(k1, (Cr, C), minval=-0.5, maxval=0.5, dtype=dtype)
        b1 = jax.random.uniform(k2, (Cr,), minval=-0.5, maxval=0.5, dtype=dtype)
        w2 = jax.random.uniform(k3, (C, Cr), minval=-0.5, maxval=0.5, dtype=dtype)
        b2 = jax.random.uniform(k4, (C,), minval=-0.5, maxval=0.5, dtype=dtype)
        return w1, b1, w2, b2

    # Case 1: small slab -> fused single-pass kernel.
    B, C, H, W, red = 2, 4, 16, 16, 4
    kx, kp, key = jax.random.split(key, 3)
    x = jax.random.normal(kx, (B, C, H, W), dtype=jnp.float32)
    w1, b1, w2, b2 = make_params(kp, C, C // red)
    out = jax.block_until_ready(se_layer(x, w1, b1, w2, b2))
    ref = se_layer_ref(x, w1, b1, w2, b2)
    assert out.shape == (B, C, H, W)
    assert jnp.allclose(out, ref, atol=1e-5, rtol=1e-5), "fused path mismatch"

    # Case 2: forced two-pass with a ragged last HW tile (HW=144, tile=128).
    B2, C2, H2, W2 = 2, 8, 12, 12
    kx2, kp2, key = jax.random.split(key, 3)
    x2 = jax.random.normal(kx2, (B2, C2, H2, W2), dtype=jnp.float32)
    w1b, b1b, w2b, b2b = make_params(kp2, C2, C2 // 4)
    out2 = jax.block_until_ready(
        se_layer(x2, w1b, b1b, w2b, b2b, force_two_pass=True, hw_tile=128))
    ref2 = se_layer_ref(x2, w1b, b1b, w2b, b2b)
    assert out2.shape == (B2, C2, H2, W2)
    assert jnp.allclose(out2, ref2, atol=1e-5, rtol=1e-5), "two-pass ragged mismatch"

    # Case 3: forced two-pass, HW an exact multiple of the tile (no-mask path).
    B3, C3, H3, W3 = 2, 8, 16, 16
    kx3, kp3, key = jax.random.split(key, 3)
    x3 = jax.random.normal(kx3, (B3, C3, H3, W3), dtype=jnp.float32)
    w1c, b1c, w2c, b2c = make_params(kp3, C3, C3 // 4)
    out3 = jax.block_until_ready(
        se_layer(x3, w1c, b1c, w2c, b2c, force_two_pass=True, hw_tile=128))
    ref3 = se_layer_ref(x3, w1c, b1c, w2c, b2c)
    assert jnp.allclose(out3, ref3, atol=1e-5, rtol=1e-5), "two-pass full-tile mismatch"

    # Case 4: bf16 activations through the fused path.
    B4, C4, H4, W4 = 2, 128, 8, 8
    kx4, kp4, key = jax.random.split(key, 3)
    x4 = jax.random.normal(kx4, (B4, C4, H4, W4), dtype=jnp.bfloat16)
    w1d, b1d, w2d, b2d = make_params(kp4, C4, C4 // 4)
    out4 = jax.block_until_ready(se_layer(x4, w1d, b1d, w2d, b2d))
    ref4 = se_layer_ref(x4.astype(jnp.float32), w1d, b1d, w2d, b2d)
    assert jnp.allclose(out4.astype(jnp.float32), ref4, atol=3e-2, rtol=3e-2), \
        "bf16 fused mismatch"

    print("KERNEL_OK")
</pallas_src>

<mosaic_0001>
module attributes {stable_mosaic.version = 11 : i64} {
  func.func @kernel(%arg0: i32, %arg1: memref<1x4x256xf32, #tpu.memory_space<vmem>>, %arg2: memref<4x1xf32, #tpu.memory_space<vmem>>, %arg3: memref<1x1xf32, #tpu.memory_space<vmem>>, %arg4: memref<1x4xf32, #tpu.memory_space<vmem>>, %arg5: memref<1x4xf32, #tpu.memory_space<vmem>>, %arg6: memref<1x4x256xf32, #tpu.memory_space<vmem>>) attributes {dimension_semantics = [#tpu.dimension_semantics<parallel>], iteration_bounds = array<i64: 2>, scalar_prefetch = 0 : i64, scratch_operands = 0 : i64, tpu.core_type = #tpu.core_type<tc>, window_params = [{transform_indices = @transform_0, window_bounds = array<i64: 1, 4, 256>}, {pipeline_mode = #tpu.pipeline_mode<synchronous>, transform_indices = @transform_1, window_bounds = array<i64: 4, 1>}, {pipeline_mode = #tpu.pipeline_mode<synchronous>, transform_indices = @transform_2, window_bounds = array<i64: 1, 1>}, {pipeline_mode = #tpu.pipeline_mode<synchronous>, transform_indices = @transform_3, window_bounds = array<i64: 1, 4>}, {pipeline_mode = #tpu.pipeline_mode<synchronous>, transform_indices = @transform_4, window_bounds = array<i64: 1, 4>}, {transform_indices = @transform_5, window_bounds = array<i64: 1, 4, 256>}]} {
    %c0 = arith.constant 0 : index
    %c0_0 = arith.constant 0 : index
    %c0_1 = arith.constant 0 : index
    %0 = vector.load %arg1[%c0, %c0_0, %c0_1] : memref<1x4x256xf32, #tpu.memory_space<vmem>>, vector<1x4x256xf32>
    %cst = arith.constant dense<0.000000e+00> : vector<1x4xf32>
    %1 = vector.multi_reduction <add>, %0, %cst [2] : vector<1x4x256xf32> to vector<1x4xf32>
    %cst_2 = arith.constant 3.906250e-03 : f32
    %2 = vector.broadcast %cst_2 : f32 to vector<1x4xf32>
    %3 = arith.mulf %1, %2 : vector<1x4xf32>
    %c0_3 = arith.constant 0 : index
    %c0_4 = arith.constant 0 : index
    %4 = vector.load %arg2[%c0_3, %c0_4] : memref<4x1xf32, #tpu.memory_space<vmem>>, vector<4x1xf32>
    %cst_5 = arith.constant dense<0.000000e+00> : vector<1x1xf32>
    %5 = tpu.matmul %3, %4, %cst_5 {dimension_numbers = #tpu.dot_dimension_numbers<[1], [0], [0], [1], [0, 0, 1, 1], [], []>} : vector<1x4xf32>, vector<4x1xf32>, vector<1x1xf32> -> vector<1x1xf32>
    %c0_6 = arith.constant 0 : index
    %c0_7 = arith.constant 0 : index
    %6 = vector.load %arg3[%c0_6, %c0_7] : memref<1x1xf32, #tpu.memory_space<vmem>>, vector<1x1xf32>
    %7 = arith.addf %5, %6 : vector<1x1xf32>
    %cst_8 = arith.constant 0.000000e+00 : f32
    %8 = vector.broadcast %cst_8 : f32 to vector<1x1xf32>
    %9 = arith.maximumf %7, %8 : vector<1x1xf32>
    %c0_9 = arith.constant 0 : index
    %c0_10 = arith.constant 0 : index
    %10 = vector.load %arg4[%c0_9, %c0_10] : memref<1x4xf32, #tpu.memory_space<vmem>>, vector<1x4xf32>
    %cst_11 = arith.constant dense<0.000000e+00> : vector<1x4xf32>
    %11 = tpu.matmul %9, %10, %cst_11 {dimension_numbers = #tpu.dot_dimension_numbers<[1], [0], [0], [1], [0, 0, 1, 1], [], []>} : vector<1x1xf32>, vector<1x4xf32>, vector<1x4xf32> -> vector<1x4xf32>
    %c0_12 = arith.constant 0 : index
    %c0_13 = arith.constant 0 : index
    %12 = vector.load %arg5[%c0_12, %c0_13] : memref<1x4xf32, #tpu.memory_space<vmem>>, vector<1x4xf32>
    %13 = arith.addf %11, %12 : vector<1x4xf32>
    %cst_14 = arith.constant 0.000000e+00 : f32
    %cst_15 = arith.constant 1.000000e+00 : f32
    %14 = vector.broadcast %cst_14 : f32 to vector<1x4xf32>
    %15 = arith.maximumf %14, %13 : vector<1x4xf32>
    %16 = vector.broadcast %cst_15 : f32 to vector<1x4xf32>
    %17 = arith.minimumf %16, %15 : vector<1x4xf32>
    %18 = vector.shape_cast %17 : vector<1x4xf32> to vector<1x4x1xf32>
    %19 = vector.broadcast %18 : vector<1x4x1xf32> to vector<1x4x256xf32>
    %20 = arith.mulf %0, %19 : vector<1x4x256xf32>
    %c0_16 = arith.constant 0 : index
    %c0_17 = arith.constant 0 : index
    %c0_18 = arith.constant 0 : index
    %21 = vector.load %arg6[%c0_16, %c0_17, %c0_18] : memref<1x4x256xf32, #tpu.memory_space<vmem>>, vector<1x4x256xf32>
    tpu.vector_store %arg6[%c0_16, %c0_17, %c0_18], %20 {strides = array<i32>} : memref<1x4x256xf32, #tpu.memory_space<vmem>>, vector<1x4x256xf32>,
    return
  }
  func.func @transform_0(%arg0: i32) -> (i32, i32, i32) {
    %c0_i32 = arith.constant 0 : i32
    %c0_i32_0 = arith.constant 0 : i32
    %c0_i32_1 = arith.constant 0 : i32
    return %arg0, %c0_i32, %c0_i32_0 : i32, i32, i32
  }
  func.func @transform_1(%arg0: i32) -> (i32, i32) {
    %c0_i32 = arith.constant 0 : i32
    %c0_i32_0 = arith.constant 0 : i32
    %c0_i32_1 = arith.constant 0 : i32
    return %c0_i32, %c0_i32_0 : i32, i32
  }
  func.func @transform_2(%arg0: i32) -> (i32, i32) {
    %c0_i32 = arith.constant 0 : i32
    %c0_i32_0 = arith.constant 0 : i32
    %c0_i32_1 = arith.constant 0 : i32
    return %c0_i32, %c0_i32_0 : i32, i32
  }
  func.func @transform_3(%arg0: i32) -> (i32, i32) {
    %c0_i32 = arith.constant 0 : i32
    %c0_i32_0 = arith.constant 0 : i32
    %c0_i32_1 = arith.constant 0 : i32
    return %c0_i32, %c0_i32_0 : i32, i32
  }
  func.func @transform_4(%arg0: i32) -> (i32, i32) {
    %c0_i32 = arith.constant 0 : i32
    %c0_i32_0 = arith.constant 0 : i32
    %c0_i32_1 = arith.constant 0 : i32
    return %c0_i32, %c0_i32_0 : i32, i32
  }
  func.func @transform_5(%arg0: i32) -> (i32, i32, i32) {
    %c0_i32 = arith.constant 0 : i32
    %c0_i32_0 = arith.constant 0 : i32
    %c0_i32_1 = arith.constant 0 : i32
    return %arg0, %c0_i32, %c0_i32_0 : i32, i32, i32
  }
}

</mosaic_0001>

<bundles_post_ra>
// kernel: tpu_custom_call.1
= control target key start
LH: loop header
LB: loop body
LE: loop exit
PB: predicated region body
PF: predicated region fallthrough
CT: control target
= control target key end

     0   :  { %s895_s0 = inlined_call_operand.hbm [shape: f32[2,4,256], index: 0, kind: input, shape index: {}]   ;;  %s896_s1 = inlined_call_operand.vmem [shape: f32[4,1], index: 1, kind: input, shape index: {}]   ;;  %s897_s2 = inlined_call_operand.<no memory space> [shape: f32[1,1], index: 2, kind: input, shape index: {}]   ;;  %s898_s3 = inlined_call_operand.vmem [shape: f32[1,4], index: 3, kind: input, shape index: {}]   ;;  %s899_s4 = inlined_call_operand.vmem [shape: f32[1,4], index: 4, kind: input, shape index: {}]   ;;  %s900_s5 = inlined_call_operand.hbm [shape: f32[2,4,256], index: 5, kind: output, shape index: {}]  }
   0x1   :  { %v10_v0 = vstv %s897_s2 }
   0x2   :  { %11 = vst [vmem:[#allocation2] sm:$0x1] %v10_v0 }
   0x3   :  { %12 = vsyncpa [#allocation4], 0 }
   0x4   :  { %14 = vsyncpa [#allocation4 + $0x1], 0 }
   0x5   :  { %15 = vsyncpa [#allocation5], 0 }
   0x6   :  { %17 = vsyncpa [#allocation5 + $0x1], 0  ;;  %s741_s20 = smov 0   ;;  %s743_s21 = smov 0  }
   0x7   :  { %s745_s22 = smov 0   ;;  %s747_s23 = smov 0  }
   0x8 LB: > { %s762_s2 = sadd.s32 4294967295, %s701_s23   ;;  %s525_s24 = sadd.s32 4294967294, %s701_s23   ;;  %s701_s23 = sphi %s747_s23, %s917_s23   ;;  %s697_s22 = sphi %s745_s22, %s916_s22   ;;  %s693_s21 = sphi %s743_s21, %s915_s21   ;;  %s689_s20 = sphi %s741_s20, %s914_s20  }
   0x9   : > { %s766_s25 = sadd.s32 1, %s701_s23   ;;  %s30_s26 = sadd.s32 1, %s697_s22 }
   0xa   : > { %s27_s27 = ssub.s32 %s701_s23, %s766_s25  ;;  %p37_p0 = scmp.ne.s32.totalorder %s697_s22, %s693_s21 }
   0xb   : > { %p28_p1 = scmp.eq.s32.totalorder %s27_s27, 0  ;;  %p38_p2 = scmp.eq.s32.totalorder %s701_s23, 0 }
   0xc   : > { %p43_p3 = scmp.ne.s32.totalorder %s693_s21, %s689_s20  ;;  %p44_p4 = scmp.eq.s32.totalorder %s762_s2, 0 }
   0xd   : > { %s778_s28 = scalar_select %p28_p1, %s697_s22, %s30_s26  }
   0xe   : > { %p780_p5 = por %p38_p2, %p37_p0  ;;  %p784_p6 = por %p44_p4, %p43_p3 }
   0xf   : > { %p151_p7 = scmp.eq.s32.totalorder %s762_s2, 1  ;;  %p157_p8 = scmp.eq.s32.totalorder %s525_s24, 1 }
  0x10   : > { %s904_s30 = scalar_select %p784_p6, 1, 0 }
  0x11   : > { %p571_p10 = scmp.lt.s32.totalorder %s701_s23, 2  ;;  %p791_p11 = por %p151_p7, %p37_p0 }
  0x12   : > { %p795_p12 = por %p157_p8, %p43_p3  ;;  %s189_s8 = sand.u32 1, %s697_s22  }
  0x13   : > { %s905_s6 = scalar_select %p791_p11, 1, 0 }
  0x14   : > { %s906_s7 = scalar_select %p795_p12, 1, 0 }
  0x15   : > { %s543_s9 = sshll.u32 %s701_s23, 7  ;;  %s528_s10 = sshll.u32 %s189_s8, 3 }
  0x16   : > { %s804_s13 = scalar_lea.hbm %s895_s0, %s543_s9  ;;  %s193_s14 = scalar_lea.vmem [#allocation3], %s528_s10 }
  0x17   : > { %s201_s15 = sshll.u32 %s193_s14, 4  ;;  %p808_p13 = pnand %p571_p10, %p780_p5  ;;  %s812_s15 = int_to_ptr.vmem [resolvable:$true] %s201_s15 }
  0x18   : > { %s190_s17 = scalar_lea.sflag [#allocation4], %s189_s8  ;;  %s609_s18 = scalar_lea.hbm %s804_s13, 128 }
  0x19   : > { %p610_p2 = scmp.ne.s32.totalorder %s804_s13, %s609_s18  ;;  %p611_p3 = pneg %p808_p13 }
  0x1a   : > { %s614_s26 = scalar_lea.hbm %s895_s0, 256  ;;  %p615_p5 = scmp.lt.s32.totalorder %s804_s13, %s895_s0 }
  0x1b   : > { %p612_p4 = pnand %p611_p3, %p610_p2  ;;  %p616_p8 = scmp.lt.s32.totalorder %s614_s26, %s609_s18 }
  0x1d   : > { %p613_p7 = pneg %p612_p4  ;;  %p617_p10 = por %p616_p8, %p615_p5 }
  0x1f   : > { %p618_p9 = pnand %p617_p10, %p613_p7 }
  0x21   : > { %621 = shalt.err (!%p618_p9)
}
  0x22   : > { %s622_s8 = scalar_lea.vmem %s812_s15, 128  ;;  %s703_s9 = smov [#allocation3]  }
  0x23   : > { %p623_p0 = scmp.ne.s32.totalorder %s812_s15, %s622_s8  ;;  %s627_s10 = sshll.u32 %s703_s9, 4  ;;  %s628_s10 = int_to_ptr.vmem [resolvable:$false] %s627_s10 }
  0x24   : > { %s629_s11 = scalar_lea.vmem %s628_s10, 256  ;;  %p630_p4 = scmp.lt.s32.totalorder %s812_s15, %s628_s10 }
  0x25   : > { %p625_p1 = pnand %p623_p0, %p611_p3  ;;  %p631_p12 = scmp.lt.s32.totalorder %s629_s11, %s622_s8 }
  0x27   : > { %p626_p2 = pneg %p625_p1  ;;  %p632_p11 = por %p631_p12, %p630_p4 }
  0x29   : > { %p633_p6 = pnand %p632_p11, %p626_p2 }
  0x2b   : > { %636 = shalt.err (!%p633_p6)
}
  0x2c   : > { %566 = dma.hbm_to_vmem [thread:$0]  (!%p808_p13), %s804_s13, 128, %s812_s15, %s190_s17  }
  0x2d   : > { %p908_p9 = scmp.lt.s32.totalorder %s701_s23, 3  ;;  %p909_p7 = scmp.ge.s32.totalorder %s701_s23, 1 }
  0x2f   : > { %p207_p0 = pnand %p909_p7, %p908_p9 }
  0x30   : > { %s839_s12 = sand.u32 (!%p207_p0), 1, %s693_s21   ;;  %p910_p6 = scmp.ne.s32.totalorder (!%p207_p0), %s904_s30, 0 }
  0x31   : > { %210 = sbr.rel (%p207_p0) target bundleno = 733 (0x2dd), region = 40  ;;  %s532_s14 = sshll.u32 (!%p207_p0), %s839_s12, 3 }
  0x32   : > { %s213_s18 = scalar_lea.sflag (!%p207_p0), [#allocation4], %s839_s12  ;;  %s216_s16 = scalar_lea.vmem (!%p207_p0), [#allocation3], %s532_s14 }
  0x36   : > { %680 = dma.done.wait (%p910_p6), %s213_s18, 128  }
  0x37   : > { %682 = vsyncadd (%p910_p6), %s213_s18, 4294967168  ;;  %vm247_vm0 = vcmask 1043456   ;;  %v243_v1 = vld [vmem:[%s216_s16] sm:$0xff]  ;;  %v704_v6 = vmov 0.0   ;;  %vm705_vm1 = vmmov 0   ;;  %v257_v8 = vlaneseq  ;;  %s544_s26 = sshll.u32 %s762_s2, 7 }
  0x38   : > { %v245_v2 = vcombine.high %v243_v1, %v243_v1  ;;  %v248_v3 = vsel %vm247_vm0, %v243_v1, 0.0  ;;  %549 = vmatprep.subr.mxu0 %v704_v6  ;;  %v254_v7 = vld [vmem:[%s896_s1] sm:$0xf]  ;;  %554 = vmatprep.subr.mxu1 %v704_v6  ;;  %vm263_vm2 = vcmask 31744   ;;  %vm346_vm3 = vcmask 1040384   ;;  %s242_s27 = scalar_lea.vmem [#allocation6], %s532_s14  ;;  %s453_s10 = scalar_lea.hbm %s900_s5, %s544_s26 }
  0x39   : > { %550 = vmatpush3.msk.msra.mxu0 %vm247_vm0, %v254_v7  ;;  %551 = vmatprep.mubr.msk.f32.mxu0 %vm705_vm1, %v704_v6  ;;  %v258_v9 = vand.u32 127, %v257_v8  ;;  %v260_v10 = vshrl.u32 %v257_v8, 7  ;;  %v340_v15 = vld [vmem:[%s898_s3] sm:$0x1]  ;;  %vm342_vm4 = vcmask 7168   ;;  %s455_s29 = sshll.u32 %s242_s27, 4  ;;  %s456_s29 = int_to_ptr.vmem [resolvable:$true] %s455_s29 }
  0x3a   : > { %v249_v4 = vsel %vm247_vm0, %v245_v2, 0.0  ;;  %556 = vmatprep.mubr.msk.f32.mxu1 %vm705_vm1, %v704_v6  ;;  %555 = vmatpush3.msk.msra.mxu1 %vm346_vm3, %v340_v15  ;;  %v255_v16 = vld [vmem:[#allocation2] sm:$0x1]  ;;  %v706_v29 = vmov 839922192   ;;  %s441_s11 = scalar_lea.sflag [#allocation5], %s839_s12 }
  0x3b   : > { %v250_v5 = vadd.f32 %v249_v4, %v248_v3  ;;  %v261_v11 = vsub.s32 %v258_v9, %v260_v10  ;;  %v341_v21 = vld [vmem:[%s899_s4] sm:$0x1]  ;;  %v424_v26 = vsub.s32 0, %v260_v10  ;;  %v431_v30 = vunpack.c.l.s4 %v706_v29  ;;  %s637_s18 = scalar_lea.vmem %s456_s29, 128  ;;  %p911_p12 = scmp.ne.s32.totalorder %s905_s6, 0 }
  0x3c   : > { %p638_p11 = scmp.ne.s32.totalorder %s456_s29, %s637_s18  ;;  %s707_s16 = smov [#allocation6]  }
  0x3d   : > { %251 = vadd.xlane.f32.xlu0 %v250_v5  ;;  %v432_v31 = vunpack.c.0.s8 %v431_v30  ;;  %s641_s13 = sshll.u32 %s707_s16, 4  ;;  %s642_s13 = int_to_ptr.vmem [resolvable:$false] %s641_s13 }
  0x3e   : > { %p639_p13 = pnand %p638_p11, %p911_p12  ;;  %s643_s2 = scalar_lea.vmem %s642_s13, 256 }
  0x3f   : > { %v435_v32 = vsub.s32 %v432_v31, %v260_v10  ;;  %p644_p3 = scmp.lt.s32.totalorder %s456_s29, %s642_s13  ;;  %p645_p5 = scmp.lt.s32.totalorder %s643_s2, %s637_s18 }
  0x40   : > { %p640_p1 = pneg %p639_p13 }
  0x41   : > { %p646_p8 = por %p645_p5, %p644_p3 }
  0x43   : > { %p647_p10 = pnand %p646_p8, %p640_p1 }
  0xc6   : > { %v252_v12 = vpop.xlane.xlu0 %251 }
  0xc7   : > { %v253_v13 = vmul.f32 0.00390625, %v252_v12 }
  0xc9   : > { %v262_v14 = vrot.slane %v253_v13, %v261_v11 }
  0xcb   : > { %552 = vmatmul.mubr.msk.f32.vlgmr.msra.gmra.mxu0 %vm263_vm2, %v262_v14 }
 0x18b   : > { %v335_v17 = vpop.f32.mrf.mxu0 }
 0x18c   : > { %v336_v18 = vadd.f32 %v335_v17, %v255_v16 }
 0x18d   : > { %v553_v19 = vpop.f32.mrf.mxu0 }
 0x18e   : > { %v339_v20 = vmax.f32 %v336_v18, 0.0 }
 0x190   : > { %557 = vmatmul.mubr.msk.f32.vlgmr.msra.gmra.mxu1 %vm342_vm4, %v339_v20 }
 0x250   : > { %v416_v22 = vpop.f32.mrf.mxu1 }
 0x251   : > { %v417_v23 = vadd.f32 %v416_v22, %v341_v21 }
 0x252   : > { %v558_v24 = vpop.f32.mrf.mxu1 }
 0x253   : > { %v420_v25 = vmax.f32 %v417_v23, 0.0 }
 0x255   : > { %v421_v27 = vmin.f32 %v420_v25, 1.0 }
 0x257   : > { %v425_v28 = vrot.slane %v421_v27, %v424_v26 }
 0x259   : > { %427 = vbcast.lane.b32.xlu0 %v425_v28, 256 }
 0x2cb   : > { %v428_v33 = vpop.permute.xlu0 %427 }
 0x2cc   : > { %v436_v34 = vrot.slane %v428_v33, %v435_v32 }
 0x2ce   : > { %v438_v35 = vmul.f32 %v436_v34, %v243_v1 }
 0x2d0   : > { %439 = vst [vmem:[%s242_s27] sm:$0xff] %v438_v35 }
 0x2d1   : > { %650 = shalt.err (!%p647_p10)
}
 0x2d2   : > { %s651_s14 = scalar_lea.hbm %s453_s10, 128  ;;  %s655_s30 = scalar_lea.hbm %s900_s5, 256 }
 0x2d3   : > { %p652_p2 = scmp.ne.s32.totalorder %s453_s10, %s651_s14  ;;  %p656_p7 = scmp.lt.s32.totalorder %s453_s10, %s900_s5 }
 0x2d4   : > { %p657_p0 = scmp.lt.s32.totalorder %s655_s30, %s651_s14 }
 0x2d5   : > { %p653_p4 = pnand %p652_p2, %p911_p12 }
 0x2d6   : > { %p658_p6 = por %p657_p0, %p656_p7 }
 0x2d7   : > { %p654_p9 = pneg %p653_p4 }
 0x2d9   : > { %p659_p11 = pnand %p658_p6, %p654_p9 }
 0x2db   : > { %662 = shalt.err (!%p659_p11)
}
 0x2dc   : > { %561 = dma.vmem_to_hbm [thread:$0]  (%p911_p12), %s456_s29, 128, %s453_s10, %s441_s11  }
 0x2dd PF: > { %s467_s24 = sand.u32 1, %s689_s20   ;;  %p912_p13 = scmp.ne.s32.totalorder %s906_s7, 0 }
 0x2de   : > { %p913_p1 = scmp.ge.s32.totalorder %s701_s23, 2  ;;  %s468_s26 = scalar_lea.sflag [#allocation5], %s467_s24 }
 0x2e0   : > { %p568_p3 = pnand %p913_p1, %p912_p13 }
 0x2e2   : > { %p569_p5 = pneg %p568_p3 }
 0x2e4   : > { %684 = dma.done.wait (%p569_p5), %s468_s26, 128  }
 0x2e5   : > { %686 = vsyncadd (%p569_p5), %s468_s26, 4294967168  ;;  %p20_p8 = scmp.ge.s32.totalorder %s766_s25, 4   ;;  %s914_s20 = smov %s693_s21 }
 0x2e6   : > { %s915_s21 = smov %s697_s22  ;;  %s916_s22 = smov %s778_s28 }
 0x2e7   : > { %s917_s23 = smov %s766_s25  ;;  %22 = sbr.rel (!%p20_p8) target bundleno = 8 (0x8), region = 85 }
 0x2ec   :  { %473 = vsyncpa [#allocation4], 1 }
 0x2ed   :  { %475 = vsyncpa [#allocation4 + $0x1], 1 }
 0x2ee   :  { %476 = vsyncpa [#allocation5], 1 }
 0x2ef   :  { %478 = vsyncpa [#allocation5 + $0x1], 1 }

</bundles_post_ra>
